<compile_context>
chip_gen: v6e
topology: v6e:2x2x1
jax: 0.10.0
libtpu: 0.0.40
codegen_flags: <defaults>
</compile_context>

<pallas_src>
import functools

import jax
import jax.numpy as jnp
from jax.experimental import pallas as pl
from jax.experimental.pallas import tpu as pltpu


def _round_up(x: int, m: int) -> int:
    return ((x + m - 1) // m) * m


def _pick_block(dim_p: int, target: int, align: int) -> int:
    """Largest multiple of `align` that divides dim_p and is <= target."""
    best = align
    d = align
    limit = min(dim_p, max(target, align))
    while d <= limit:
        if dim_p % d == 0:
            best = d
        d += align
    return best


def _mlp_kernel(x_ref, w1_ref, b1_ref, w2_ref, b2_ref, o_ref):
    """One (batch-tile, out-tile, hidden-chunk) grid step of the fused MLP.

    x_ref : (bm, in_p)   bf16    batch tile of x
    w1_ref: (in_p, bh)   bf16    hidden-chunk of W1 columns
    b1_ref: (1, bh)      f32     hidden-chunk of b1
    w2_ref: (bh, bn)     bf16    (hidden-chunk, out-tile) block of W2
    b2_ref: (1, bn)      f32     out-tile chunk of b2
    o_ref : (bm, bn)     f32     output tile; resident across the hidden axis
                                 and used directly as the accumulator.
    """
    h_idx = pl.program_id(2)

    # Fold bias2 into the f32 output tile once per (batch, out) tile.
    @pl.when(h_idx == 0)
    def _init():
        o_ref[...] = jnp.broadcast_to(b2_ref[...], o_ref.shape)

    # First linear (this hidden chunk) + bias1 + ReLU.  MXU, f32 accumulate.
    h = jnp.dot(x_ref[...], w1_ref[...], preferred_element_type=jnp.float32)
    h = jnp.maximum(h + b1_ref[...], 0.0)

    # Second linear: accumulate this hidden chunk's contribution directly into
    # the f32 output tile (no separate accumulator scratch, no finalize copy).
    o_ref[...] += jnp.dot(
        h.astype(w2_ref.dtype), w2_ref[...], preferred_element_type=jnp.float32
    )


def prepare_mlp_params(w1, b1, w2, b2, *, compute_dtype=jnp.bfloat16):
    """Pad weights/biases to lane-dense (128-multiple) sizes and cast ONCE.

    Done outside the per-call path so each forward call does not re-read and
    re-cast the full weight matrices in XLA before the kernel starts.
    """
    input_dim, hidden_dim = w1.shape
    output_dim = w2.shape[1]
    in_p = _round_up(input_dim, 128)
    hid_p = _round_up(hidden_dim, 128)
    out_p = _round_up(output_dim, 128)

    w1p = jnp.pad(w1, ((0, in_p - input_dim), (0, hid_p - hidden_dim))).astype(compute_dtype)
    b1p = jnp.pad(b1.reshape(1, -1), ((0, 0), (0, hid_p - hidden_dim))).astype(jnp.float32)
    w2p = jnp.pad(w2, ((0, hid_p - hidden_dim), (0, out_p - output_dim))).astype(compute_dtype)
    b2p = jnp.pad(b2.reshape(1, -1), ((0, 0), (0, out_p - output_dim))).astype(jnp.float32)

    return {"w1": w1p, "b1": b1p, "w2": w2p, "b2": b2p,
            "dims": (input_dim, hidden_dim, output_dim)}


@functools.partial(
    jax.jit,
    static_argnames=("input_dim", "output_dim", "block_m", "block_n", "block_h"),
)
def _mlp_forward_padded(x, w1p, b1p, w2p, b2p, *, input_dim, output_dim,
                        block_m, block_n, block_h):
    B = x.shape[0]
    in_p, hid_p = w1p.shape
    out_p = w2p.shape[1]
    compute_dtype = w1p.dtype
    isz = jnp.dtype(compute_dtype).itemsize

    # Tile sizes: divisors of the 128-rounded dims (no round-up-to-block waste).
    B_p = _round_up(B, 8)
    bm = _pick_block(B_p, block_m, 8)
    bh = _pick_block(hid_p, block_h, 128)
    bn = _pick_block(out_p, block_n, 128)

    n_i, n_j, n_h = B_p // bm, out_p // bn, hid_p // bh
    grid = (n_i, n_j, n_h)

    # Per-call activation pad + cast (weights were prepared once, outside jit).
    xd = jnp.pad(x, ((0, B_p - B), (0, in_p - input_dim))).astype(compute_dtype)

    # VMEM budget: double-buffered tiles + the bm*bh f32/bf16 intermediate.
    vmem_est = (
        2 * (bm * in_p * isz          # x tile
             + in_p * bh * isz        # w1 tile
             + bh * 4                 # b1 tile
             + bh * bn * isz          # w2 tile
             + bn * 4                 # b2 tile
             + bm * bn * 4)           # f32 output tile (doubles as accumulator)
        + bm * bh * 4 + bm * bh * isz  # hidden intermediate (f32 + bf16 recast)
    )
    # Cap below the smallest per-core VMEM across generations (v7x: 64 MiB).
    vmem_limit = min(56 * 1024 * 1024,
                     max(32 * 1024 * 1024, int(vmem_est * 1.25) + (1 << 20)))

    # Cost estimate with the actual weight re-streaming factors:
    #   x  fetched once per batch tile (block index constant over j, h),
    #   w1 re-streamed once per (batch tile, out tile),
    #   w2 re-streamed once per batch tile.
    flops = 2 * B_p * (in_p * hid_p + hid_p * out_p)
    bytes_accessed = (
        B_p * in_p * isz
        + n_i * n_j * in_p * hid_p * isz
        + n_i * hid_p * out_p * isz
        + n_i * hid_p * 4
        + n_i * n_j * out_p * 4
        + B_p * out_p * 4
    )

    y_p = pl.pallas_call(
        _mlp_kernel,
        out_shape=jax.ShapeDtypeStruct((B_p, out_p), jnp.float32),
        grid_spec=pltpu.PrefetchScalarGridSpec(
            num_scalar_prefetch=0,
            grid=grid,
            in_specs=[
                pl.BlockSpec((bm, in_p), lambda i, j, h: (i, 0)),   # x batch tile
                pl.BlockSpec((in_p, bh), lambda i, j, h: (0, h)),   # W1 hidden-chunk
                pl.BlockSpec((1, bh), lambda i, j, h: (0, h)),      # b1 hidden-chunk
                pl.BlockSpec((bh, bn), lambda i, j, h: (h, j)),     # W2 (h, out) block
                pl.BlockSpec((1, bn), lambda i, j, h: (0, j)),      # b2 out-chunk
            ],
            out_specs=pl.BlockSpec((bm, bn), lambda i, j, h: (i, j)),
        ),
        compiler_params=pltpu.CompilerParams(
            # Hidden (reduction) axis must stay last and "arbitrary"; batch and
            # output-N axes are independent -> "parallel" (megacore sharding).
            dimension_semantics=("parallel", "parallel", "arbitrary"),
            vmem_limit_bytes=vmem_limit,
        ),
        cost_estimate=pl.CostEstimate(
            flops=flops, transcendentals=0, bytes_accessed=bytes_accessed
        ),
    )(xd, w1p, b1p, w2p, b2p)

    return y_p[:B, :output_dim]


def mlp_forward(x, params, *, block_m=512, block_n=512, block_h=512):
    """Pallas MLP forward: relu(x @ W1 + b1) @ W2 + b2, f32 output."""
    input_dim, hidden_dim, output_dim = params["dims"]
    del hidden_dim  # inferred from the padded weights inside the jit
    return _mlp_forward_padded(
        x, params["w1"], params["b1"], params["w2"], params["b2"],
        input_dim=input_dim, output_dim=output_dim,
        block_m=block_m, block_n=block_n, block_h=block_h,
    )


def init_mlp_params(key, input_dim, hidden_dim, output_dim):
    """Deterministic init mimicking nn.Linear's U(-1/sqrt(fan_in), 1/sqrt(fan_in))."""
    k1, k2, k3, k4 = jax.random.split(key, 4)
    bound1 = 1.0 / (input_dim ** 0.5)
    bound2 = 1.0 / (hidden_dim ** 0.5)
    # Stored as (in, out) == transpose of PyTorch's (out, in) weight; math identical.
    w1 = jax.random.uniform(k1, (input_dim, hidden_dim), jnp.float32, -bound1, bound1)
    b1 = jax.random.uniform(k2, (1, hidden_dim), jnp.float32, -bound1, bound1)
    w2 = jax.random.uniform(k3, (hidden_dim, output_dim), jnp.float32, -bound2, bound2)
    b2 = jax.random.uniform(k4, (1, output_dim), jnp.float32, -bound2, bound2)
    return w1, b1, w2, b2


if __name__ == "__main__":
    # Small shapes consistent with MLP(input_dim, hidden_dim, output_dim).
    B, input_dim, hidden_dim, output_dim = 8, 16, 32, 8

    key = jax.random.PRNGKey(0)
    kx, kp = jax.random.split(key)
    x = jax.random.normal(kx, (B, input_dim), dtype=jnp.float32)
    w1, b1, w2, b2 = init_mlp_params(kp, input_dim, hidden_dim, output_dim)

    params = prepare_mlp_params(w1, b1, w2, b2)  # one-time pad + bf16 cast
    out = mlp_forward(x, params)
    out = jax.block_until_ready(out)
    assert out.shape == (B, output_dim)

    # Reference 1: emulate the kernel's numerics (bf16 MXU inputs, f32 accumulate).
    xb = x.astype(jnp.bfloat16).astype(jnp.float32)
    w1b = w1.astype(jnp.bfloat16).astype(jnp.float32)
    w2b = w2.astype(jnp.bfloat16).astype(jnp.float32)
    hb = jnp.maximum(xb @ w1b + b1, 0.0).astype(jnp.bfloat16).astype(jnp.float32)
    ref_bf16 = hb @ w2b + b2
    assert jnp.allclose(out, ref_bf16, atol=2e-3, rtol=2e-3)

    # Reference 2: full-f32 semantics of the PyTorch module (loose tol for bf16 MXU path).
    ref_f32 = jnp.maximum(x @ w1 + b1, 0.0) @ w2 + b2
    assert jnp.allclose(out, ref_f32, atol=5e-2, rtol=5e-2)

    print("KERNEL_OK")
</pallas_src>

<mosaic_0001>
module attributes {stable_mosaic.version = 11 : i64} {
  func.func @_mlp_kernel(%arg0: i32, %arg1: i32, %arg2: i32, %arg3: memref<8x128xbf16, #tpu.memory_space<vmem>>, %arg4: memref<128x128xbf16, #tpu.memory_space<vmem>>, %arg5: memref<1x128xf32, #tpu.memory_space<vmem>>, %arg6: memref<128x128xbf16, #tpu.memory_space<vmem>>, %arg7: memref<1x128xf32, #tpu.memory_space<vmem>>, %arg8: memref<8x128xf32, #tpu.memory_space<vmem>>) attributes {dimension_semantics = [#tpu.dimension_semantics<parallel>, #tpu.dimension_semantics<parallel>, #tpu.dimension_semantics<arbitrary>], iteration_bounds = array<i64: 1, 1, 1>, scalar_prefetch = 0 : i64, scratch_operands = 0 : i64, tpu.core_type = #tpu.core_type<tc>, window_params = [{transform_indices = @transform_0, window_bounds = array<i64: 8, 128>}, {transform_indices = @transform_1, window_bounds = array<i64: 128, 128>}, {transform_indices = @transform_2, window_bounds = array<i64: 1, 128>}, {transform_indices = @transform_3, window_bounds = array<i64: 128, 128>}, {transform_indices = @transform_4, window_bounds = array<i64: 1, 128>}, {transform_indices = @transform_5, window_bounds = array<i64: 8, 128>}]} {
    %c0_i32 = arith.constant 0 : i32
    %0 = arith.cmpi eq, %arg2, %c0_i32 : i32
    %1 = arith.extui %0 : i1 to i32
    %c0_i32_0 = arith.constant 0 : i32
    %2 = arith.cmpi ne, %1, %c0_i32_0 : i32
    scf.if %2 {
      %c0_14 = arith.constant 0 : index
      %c0_15 = arith.constant 0 : index
      %17 = vector.load %arg7[%c0_14, %c0_15] : memref<1x128xf32, #tpu.memory_space<vmem>>, vector<1x128xf32>
      %18 = vector.shape_cast %17 : vector<1x128xf32> to vector<1x128xf32>
      %19 = vector.broadcast %18 : vector<1x128xf32> to vector<8x128xf32>
      %c0_16 = arith.constant 0 : index
      %c0_17 = arith.constant 0 : index
      %20 = vector.load %arg8[%c0_16, %c0_17] : memref<8x128xf32, #tpu.memory_space<vmem>>, vector<8x128xf32>
      tpu.vector_store %arg8[%c0_16, %c0_17], %19 {strides = array<i32>} : memref<8x128xf32, #tpu.memory_space<vmem>>, vector<8x128xf32>,
    } else {
    }
    %c0 = arith.constant 0 : index
    %c0_1 = arith.constant 0 : index
    %3 = vector.load %arg3[%c0, %c0_1] : memref<8x128xbf16, #tpu.memory_space<vmem>>, vector<8x128xbf16>
    %c0_2 = arith.constant 0 : index
    %c0_3 = arith.constant 0 : index
    %4 = vector.load %arg4[%c0_2, %c0_3] : memref<128x128xbf16, #tpu.memory_space<vmem>>, vector<128x128xbf16>
    %cst = arith.constant dense<0.000000e+00> : vector<8x128xf32>
    %5 = tpu.matmul %3, %4, %cst {dimension_numbers = #tpu.dot_dimension_numbers<[1], [0], [0], [1], [0, 0, 1, 1], [], []>} : vector<8x128xbf16>, vector<128x128xbf16>, vector<8x128xf32> -> vector<8x128xf32>
    %c0_4 = arith.constant 0 : index
    %c0_5 = arith.constant 0 : index
    %6 = vector.load %arg5[%c0_4, %c0_5] : memref<1x128xf32, #tpu.memory_space<vmem>>, vector<1x128xf32>
    %7 = vector.broadcast %6 : vector<1x128xf32> to vector<8x128xf32>
    %8 = arith.addf %5, %7 : vector<8x128xf32>
    %cst_6 = arith.constant 0.000000e+00 : f32
    %9 = vector.broadcast %cst_6 : f32 to vector<8x128xf32>
    %10 = arith.maximumf %8, %9 : vector<8x128xf32>
    %c0_7 = arith.constant 0 : index
    %c0_8 = arith.constant 0 : index
    %11 = vector.load %arg8[%c0_7, %c0_8] : memref<8x128xf32, #tpu.memory_space<vmem>>, vector<8x128xf32>
    %12 = arith.truncf %10 : vector<8x128xf32> to vector<8x128xbf16>
    %c0_9 = arith.constant 0 : index
    %c0_10 = arith.constant 0 : index
    %13 = vector.load %arg6[%c0_9, %c0_10] : memref<128x128xbf16, #tpu.memory_space<vmem>>, vector<128x128xbf16>
    %cst_11 = arith.constant dense<0.000000e+00> : vector<8x128xf32>
    %14 = tpu.matmul %12, %13, %cst_11 {dimension_numbers = #tpu.dot_dimension_numbers<[1], [0], [0], [1], [0, 0, 1, 1], [], []>} : vector<8x128xbf16>, vector<128x128xbf16>, vector<8x128xf32> -> vector<8x128xf32>
    %15 = arith.addf %11, %14 : vector<8x128xf32>
    %c0_12 = arith.constant 0 : index
    %c0_13 = arith.constant 0 : index
    %16 = vector.load %arg8[%c0_12, %c0_13] : memref<8x128xf32, #tpu.memory_space<vmem>>, vector<8x128xf32>
    tpu.vector_store %arg8[%c0_12, %c0_13], %15 {strides = array<i32>} : memref<8x128xf32, #tpu.memory_space<vmem>>, vector<8x128xf32>,
    return
  }
  func.func @transform_0(%arg0: i32, %arg1: i32, %arg2: i32) -> (i32, i32) {
    %c0_i32 = arith.constant 0 : i32
    %c0_i32_0 = arith.constant 0 : i32
    return %arg0, %c0_i32 : i32, i32
  }
  func.func @transform_1(%arg0: i32, %arg1: i32, %arg2: i32) -> (i32, i32) {
    %c0_i32 = arith.constant 0 : i32
    %c0_i32_0 = arith.constant 0 : i32
    return %c0_i32, %arg2 : i32, i32
  }
  func.func @transform_2(%arg0: i32, %arg1: i32, %arg2: i32) -> (i32, i32) {
    %c0_i32 = arith.constant 0 : i32
    %c0_i32_0 = arith.constant 0 : i32
    return %c0_i32, %arg2 : i32, i32
  }
  func.func @transform_3(%arg0: i32, %arg1: i32, %arg2: i32) -> (i32, i32) {
    %c0_i32 = arith.constant 0 : i32
    return %arg2, %arg1 : i32, i32
  }
  func.func @transform_4(%arg0: i32, %arg1: i32, %arg2: i32) -> (i32, i32) {
    %c0_i32 = arith.constant 0 : i32
    %c0_i32_0 = arith.constant 0 : i32
    return %c0_i32, %arg1 : i32, i32
  }
  func.func @transform_5(%arg0: i32, %arg1: i32, %arg2: i32) -> (i32, i32) {
    %c0_i32 = arith.constant 0 : i32
    return %arg0, %arg1 : i32, i32
  }
}

</mosaic_0001>

<bundles_post_ra>
// kernel: _mlp_forward_padded.1
= control target key start
LH: loop header
LB: loop body
LE: loop exit
PB: predicated region body
PF: predicated region fallthrough
CT: control target
= control target key end

     0   :  { %10 = vsyncpa [#allocation3], 0  ;;  %s519_s0 = inlined_call_operand.vmem [shape: bf16[8,128], index: 0, kind: input, shape index: {}]   ;;  %s520_s1 = inlined_call_operand.hbm [shape: bf16[128,128], index: 1, kind: input, shape index: {}]   ;;  %s521_s2 = inlined_call_operand.vmem [shape: f32[1,128], index: 2, kind: input, shape index: {}]   ;;  %s522_s3 = inlined_call_operand.hbm [shape: bf16[128,128], index: 3, kind: input, shape index: {}]   ;;  %s523_s4 = inlined_call_operand.vmem [shape: f32[1,128], index: 4, kind: input, shape index: {}]   ;;  %s524_s5 = inlined_call_operand.hbm [shape: f32[8,128], index: 5, kind: output, shape index: {}]  }
   0x1   :  { %11 = vsyncpa [#allocation6], 0 }
   0x2   :  { %12 = vsyncpa [#allocation4], 0  ;;  %s464_s18 = smov [#allocation2]  }
   0x3   :  { %s20_s19 = sshll.u32 %s464_s18, 4  ;;  %s21_s19 = int_to_ptr.vmem [resolvable:$true] %s20_s19 }
   0x4   :  { %s406_s20 = scalar_lea.vmem %s21_s19, 1024  ;;  %p411_p1 = scmp.lt.s32.totalorder %s21_s19, %s21_s19 }
   0x5   :  { %p407_p0 = scmp.ne.s32.totalorder %s21_s19, %s406_s20  ;;  %p412_p2 = scmp.lt.s32.totalorder %s406_s20, %s406_s20 }
   0x7   :  { %p413_p3 = por %p412_p2, %p411_p1 }
   0x9   :  { %p414_p4 = pnand %p413_p3, %p407_p0 }
   0xb   :  { %417 = shalt.err (!%p414_p4)
}
   0xc   :  { %s465_s21 = smov 64   ;;  %s466_s22 = smov 4  }
   0xd   :  { %26 = dma.hbm_to_vmem [thread:$0]  %s520_s1, 1024, %s21_s19, [#allocation3], %s465_s21, %s465_s21, %s466_s22  }
   0xe   :  { %s467_s25 = smov [#allocation5]  }
   0xf   :  { %s34_s26 = sshll.u32 %s467_s25, 4  ;;  %s35_s26 = int_to_ptr.vmem [resolvable:$true] %s34_s26 }
  0x10   :  { %s426_s27 = scalar_lea.vmem %s35_s26, 1024  ;;  %p431_p6 = scmp.lt.s32.totalorder %s35_s26, %s35_s26 }
  0x11   :  { %p427_p5 = scmp.ne.s32.totalorder %s35_s26, %s426_s27  ;;  %p432_p7 = scmp.lt.s32.totalorder %s426_s27, %s426_s27 }
  0x13   :  { %p433_p8 = por %p432_p7, %p431_p6 }
  0x15   :  { %p434_p9 = pnand %p433_p8, %p427_p5 }
  0x17   :  { %437 = shalt.err (!%p434_p9)
}
  0x18   :  { %40 = dma.hbm_to_vmem [thread:$0]  %s522_s3, 1024, %s35_s26, [#allocation6], %s465_s21, %s465_s21, %s466_s22  }
  0x19   :  { %458 = dma.done.wait [#allocation3], 1024  }
  0x1a   :  { %459 = vsyncadd [#allocation3], 4294966272 }
  0x1b   :  { %460 = dma.done.wait [#allocation6], 1024  }
  0x1c   :  { %461 = vsyncadd [#allocation6], 4294966272  ;;  %v468_v0 = vmov 0.0   ;;  %vm469_vm0 = vmmov 0   ;;  %v382_v1 = vld [vmem:[#allocation2 + $0x38] sm:$0xff]   ;;  %v383_v2 = vld [vmem:[#allocation2 + $0x30] sm:$0xff]  }
  0x1d   :  { %335 = vmatprep.subr.bf16.mxu0 %v468_v0  ;;  %351 = vmatprep.mubr.msk.bf16.mxu0 %vm469_vm0, %v468_v0  ;;  %v384_v3 = vld [vmem:[#allocation2 + $0x28] sm:$0xff]   ;;  %v390_v4 = vld [vmem:[#allocation5 + $0x38] sm:$0xff]   ;;  %v385_v5 = vld [vmem:[#allocation2 + $0x20] sm:$0xff]   ;;  %s470_s8 = smov [#allocation7]  }
  0x1e   :  { %355 = vmatprep.subr.bf16.mxu1 %v468_v0  ;;  %371 = vmatprep.mubr.msk.bf16.mxu1 %vm469_vm0, %v468_v0  ;;  %v391_v6 = vld [vmem:[#allocation5 + $0x30] sm:$0xff]   ;;  %v386_v7 = vld [vmem:[#allocation2 + $0x18] sm:$0xff]   ;;  %v392_v8 = vld [vmem:[#allocation5 + $0x28] sm:$0xff]   ;;  %s289_s9 = sshll.u32 %s470_s8, 4  ;;  %s290_s9 = int_to_ptr.vmem [resolvable:$true] %s289_s9 }
  0x1f   :  { %336 = vmatpush3.bf16.msra.mxu0 %v382_v1  ;;  %356 = vmatpush3.bf16.msra.mxu1 %v390_v4  ;;  %v387_v9 = vld [vmem:[#allocation2 + $0x10] sm:$0xff]   ;;  %v393_v10 = vld [vmem:[#allocation5 + $0x20] sm:$0xff]   ;;  %v388_v11 = vld [vmem:[#allocation2 + $0x8] sm:$0xff]   ;;  %p443_p11 = scmp.lt.s32.totalorder %s290_s9, %s290_s9 }
  0x20   :  { %337 = vmatprep.subr.bf16.mxu0 %v468_v0  ;;  %357 = vmatprep.subr.bf16.mxu1 %v468_v0  ;;  %v394_v12 = vld [vmem:[#allocation5 + $0x18] sm:$0xff]   ;;  %v389_v13 = vld [vmem:[#allocation2] sm:$0xff]   ;;  %v395_v14 = vld [vmem:[#allocation5 + $0x10] sm:$0xff]  }
  0x21   :  { %v62_v15 = vld [vmem:[%s519_s0] sm:$0xf]  ;;  %v396_v16 = vld [vmem:[#allocation5 + $0x8] sm:$0xff]  }
  0x22   :  { %v397_v17 = vld [vmem:[#allocation5] sm:$0xff]  }
  0x23   :  { %338 = vmatpush3.bf16.msra.mxu0 %v383_v2  ;;  %358 = vmatpush3.bf16.msra.mxu1 %v391_v6  ;;  %v300_v18 = vld [vmem:[%s521_s2] ss:$0 sm:$0xff]  ;;  %s438_s2 = scalar_lea.vmem %s290_s9, 128 }
  0x24   :  { %339 = vmatprep.subr.bf16.mxu0 %v468_v0  ;;  %359 = vmatprep.subr.bf16.mxu1 %v468_v0  ;;  %v299_v26 = vld [vmem:[%s523_s4] ss:$0 sm:$0xff]  ;;  %p439_p10 = scmp.ne.s32.totalorder %s290_s9, %s438_s2  ;;  %p444_p12 = scmp.lt.s32.totalorder %s438_s2, %s438_s2 }
  0x26   :  { %p445_p13 = por %p444_p12, %p443_p11 }
  0x27   :  { %340 = vmatpush3.bf16.msra.mxu0 %v384_v3  ;;  %360 = vmatpush3.bf16.msra.mxu1 %v392_v8 }
  0x28   :  { %341 = vmatprep.subr.bf16.mxu0 %v468_v0  ;;  %361 = vmatprep.subr.bf16.mxu1 %v468_v0  ;;  %p446_p0 = pnand %p445_p13, %p439_p10 }
  0x2b   :  { %342 = vmatpush3.bf16.msra.mxu0 %v385_v5  ;;  %362 = vmatpush3.bf16.msra.mxu1 %v393_v10 }
  0x2c   :  { %343 = vmatprep.subr.bf16.mxu0 %v468_v0  ;;  %363 = vmatprep.subr.bf16.mxu1 %v468_v0 }
  0x2f   :  { %344 = vmatpush3.bf16.msra.mxu0 %v386_v7  ;;  %364 = vmatpush3.bf16.msra.mxu1 %v394_v12 }
  0x30   :  { %345 = vmatprep.subr.bf16.mxu0 %v468_v0  ;;  %365 = vmatprep.subr.bf16.mxu1 %v468_v0 }
  0x33   :  { %346 = vmatpush3.bf16.msra.mxu0 %v387_v9  ;;  %366 = vmatpush3.bf16.msra.mxu1 %v395_v14 }
  0x34   :  { %347 = vmatprep.subr.bf16.mxu0 %v468_v0  ;;  %367 = vmatprep.subr.bf16.mxu1 %v468_v0 }
  0x37   :  { %348 = vmatpush3.bf16.msra.mxu0 %v388_v11  ;;  %368 = vmatpush3.bf16.msra.mxu1 %v396_v16 }
  0x38   :  { %349 = vmatprep.subr.bf16.mxu0 %v468_v0  ;;  %369 = vmatprep.subr.bf16.mxu1 %v468_v0 }
  0x3b   :  { %350 = vmatpush3.bf16.msra.mxu0 %v389_v13  ;;  %370 = vmatpush3.bf16.msra.mxu1 %v397_v17 }
  0x3e   :  { %352 = vmatmul.mubr.bf16.vlgmr.msra.gmra.mxu0 %v62_v15 }
  0xfe   :  { %v168_v19 = vpop.f32.mrf.mxu0 }
  0xff   :  { %v169_v20 = vadd.f32 %v300_v18, %v168_v19 }
 0x100   :  { %v353_v21 = vpop.f32.mrf.mxu0 }
 0x101   :  { %v174_v22 = vmax.f32 %v169_v20, 0.0 }
 0x102   :  { %v171_v23 = vpop.f32.mrf.mxu0 }
 0x103   :  { %v176_v24 = vpack.c.bf16 %v174_v22, %v174_v22 }
 0x104   :  { %v354_v25 = vpop.f32.mrf.mxu0 }
 0x105   :  { %372 = vmatmul.mubr.bf16.vlgmr.msra.gmra.mxu1 %v176_v24 }
 0x1c5   :  { %v275_v27 = vpop.f32.mrf.mxu1 }
 0x1c6   :  { %v281_v28 = vadd.f32 %v299_v26, %v275_v27 }
 0x1c7   :  { %v373_v29 = vpop.f32.mrf.mxu1 }
 0x1c8   :  { %282 = vst [vmem:[#allocation7] sm:$0xff] %v281_v28 }
 0x1c9   :  { %v278_v30 = vpop.f32.mrf.mxu1 }
 0x1ca   :  { %449 = shalt.err (!%p446_p0)
}
 0x1cb   :  { %292 = dma.vmem_to_hbm [thread:$0]  %s290_s9, 128, %s524_s5, [#allocation4]   ;;  %v374_v31 = vpop.f32.mrf.mxu1 }
 0x1cc   :  { %462 = dma.done.wait [#allocation4], 128  }
 0x1cd   :  { %463 = vsyncadd [#allocation4], 4294967168 }
 0x1ce   :  { %296 = vsyncpa [#allocation3], 1 }
 0x1cf   :  { %297 = vsyncpa [#allocation6], 1 }
 0x1d0   :  { %298 = vsyncpa [#allocation4], 1 }

</bundles_post_ra>
